<compile_context>
chip_gen: v5e
topology: v5e:2x2
jax: 0.10.0
libtpu: 0.0.40
codegen_flags: <defaults>
</compile_context>

<pallas_src>
import functools

import jax
import jax.numpy as jnp
from jax import lax
from jax.experimental import pallas as pl
from jax.experimental.pallas import tpu as pltpu

LANE = 128  # vreg lane width


def _cdiv(a, b):
    return (a + b - 1) // b


def _leaky_relu(x, slope):
    # For 0 < slope < 1, max(x, slope*x) == LeakyReLU(x); pure VPU, no select mask.
    return jnp.maximum(x, slope * x)


def _mlp_kernel(x_ref, w0_ref, b0_ref, w1_ref, b1_ref, w2_ref, b2_ref, o_ref,
                *, slope):
    """Whole-MLP forward for one batch tile.

    x_ref : (Bt, n_in)   f32    activations in natural [batch, feature] layout
    w*_ref: (out, in)    bf16   PyTorch nn.Linear layout (resident in VMEM)
    b*_ref: (out, 1)     f32
    o_ref : (n_out, Bt)  f32    batch-on-lane (lane-dense) output
    """
    # Cast the streamed f32 tile to the compute dtype inside the kernel.
    x = x_ref[...].astype(w0_ref.dtype)            # (Bt, n_in)

    # Layer 0 as a transposed contraction: contract n_in of both operands,
    # result lands directly in (width, Bt) batch-on-lane layout.
    h = lax.dot_general(
        w0_ref[...], x,
        dimension_numbers=(((1,), (1,)), ((), ())),
        preferred_element_type=jnp.float32,
    ) + b0_ref[...]
    h = _leaky_relu(h, slope)

    h = jnp.dot(w1_ref[...], h.astype(w1_ref.dtype),
                preferred_element_type=jnp.float32) + b1_ref[...]
    h = _leaky_relu(h, slope)

    h = jnp.dot(w2_ref[...], h.astype(w2_ref.dtype),
                preferred_element_type=jnp.float32) + b2_ref[...]

    o_ref[...] = h.astype(o_ref.dtype)


def met_network_forward(data, params, *, batch_tile=8192,
                        compute_dtype=jnp.bfloat16, negative_slope=0.01):
    """METNetwork forward pass (== MLP, since do_proc=False).

    data:   [B, n_in] float32
    params: dict with PyTorch-convention weights:
            w0 (width, n_in), b0 (width,),
            w1 (width, width), b1 (width,),
            w2 (n_out, width), b2 (n_out,)
    Returns [B, n_out] float32.
    """
    B, n_in = data.shape
    width = params["w0"].shape[0]
    n_out = params["w2"].shape[0]

    # --- tile / padding bookkeeping -----------------------------------------
    pad_lane = _cdiv(B, LANE) * LANE                     # batch to lane multiple
    bt_req = max(LANE, (int(batch_tile) // LANE) * LANE)
    grid_n = _cdiv(pad_lane, bt_req)
    if pad_lane >= 2 * LANE:
        grid_n = max(grid_n, 2)                          # v7x: use both TCs
    bt = _cdiv(_cdiv(pad_lane, grid_n), LANE) * LANE     # balanced, lane-mult tile
    pad_b = grid_n * bt

    # --- operand preparation (no transpose, no bf16 copy of the batch) ------
    x = data.astype(jnp.float32)
    if pad_b != B:
        x = jnp.pad(x, ((0, pad_b - B), (0, 0)))         # ragged-tail rows only

    # weights stay in PyTorch (out, in) layout; cast to compute dtype (VMEM resident)
    w0 = params["w0"].astype(compute_dtype)
    w1 = params["w1"].astype(compute_dtype)
    w2 = params["w2"].astype(compute_dtype)
    # biases in fp32, shaped (out, 1) to broadcast over the lane (batch) axis
    b0 = params["b0"].reshape(width, 1).astype(jnp.float32)
    b1 = params["b1"].reshape(width, 1).astype(jnp.float32)
    b2 = params["b2"].reshape(n_out, 1).astype(jnp.float32)

    full = lambda shape: pl.BlockSpec(shape, lambda i: (0, 0))

    wbytes = 2 * (width * n_in + width * width + n_out * width) \
        + 4 * (2 * width + n_out)
    cost = pl.CostEstimate(
        flops=2 * pad_b * (n_in * width + width * width + width * n_out),
        transcendentals=0,
        bytes_accessed=pad_b * n_in * 4 + wbytes + n_out * pad_b * 4,
    )

    out_t = pl.pallas_call(
        functools.partial(_mlp_kernel, slope=float(negative_slope)),
        out_shape=jax.ShapeDtypeStruct((n_out, pad_b), jnp.float32),
        grid_spec=pltpu.PrefetchScalarGridSpec(
            num_scalar_prefetch=0,
            grid=(grid_n,),
            in_specs=[
                pl.BlockSpec((bt, n_in), lambda i: (i, 0)),   # x tile (streamed, f32)
                full((width, n_in)),                          # w0 (resident)
                full((width, 1)),                             # b0
                full((width, width)),                         # w1
                full((width, 1)),                             # b1
                full((n_out, width)),                         # w2
                full((n_out, 1)),                             # b2
            ],
            out_specs=pl.BlockSpec((n_out, bt), lambda i: (0, i)),
        ),
        compiler_params=pltpu.CompilerParams(
            dimension_semantics=("parallel",),
        ),
        cost_estimate=cost,
    )(x, w0, b0, w1, b1, w2, b2)

    # back to (B, n_out); the (n_out, pad_b) slab is tiny (n_out == 2)
    return jnp.transpose(out_t)[:B]


def make_params(key, n_in, width, n_out):
    """Deterministic synthetic parameters in PyTorch nn.Linear layout."""
    ks = jax.random.split(key, 6)

    def lin(kw, kb, fan_out, fan_in):
        bound = 1.0 / jnp.sqrt(fan_in)
        w = jax.random.uniform(kw, (fan_out, fan_in), jnp.float32, -bound, bound)
        b = jax.random.uniform(kb, (fan_out,), jnp.float32, -bound, bound)
        return w, b

    w0, b0 = lin(ks[0], ks[1], width, n_in)
    w1, b1 = lin(ks[2], ks[3], width, width)
    w2, b2 = lin(ks[4], ks[5], n_out, width)
    return dict(w0=w0, b0=b0, w1=w1, b1=b1, w2=w2, b2=b2)


def reference_forward(data, params, compute_dtype=jnp.bfloat16,
                      negative_slope=0.01):
    """Pure-JAX reference mirroring the kernel's bf16-in / fp32-accumulate math."""
    def dot32(a, b):
        return jnp.dot(a.astype(compute_dtype), b.astype(compute_dtype),
                       preferred_element_type=jnp.float32)

    h = dot32(data, params["w0"].T) + params["b0"]
    h = _leaky_relu(h, negative_slope)
    h = dot32(h, params["w1"].T) + params["b1"]
    h = _leaky_relu(h, negative_slope)
    h = dot32(h, params["w2"].T) + params["b2"]
    return h


if __name__ == "__main__":
    key = jax.random.PRNGKey(0)
    k_data, k_par = jax.random.split(key)

    # small shapes consistent with the module (n_in = len(inpt_list), n_out = 2)
    B, N_IN, WIDTH, N_OUT = 8, 16, 32, 2
    data = jax.random.normal(k_data, (B, N_IN), dtype=jnp.float32)
    params = make_params(k_par, N_IN, WIDTH, N_OUT)

    fwd = jax.jit(met_network_forward,
                  static_argnames=("batch_tile", "compute_dtype",
                                   "negative_slope"))
    out = fwd(data, params)                       # bf16 MXU, fp32 accumulate
    out = jax.block_until_ready(out)

    ref = reference_forward(data, params)
    assert out.shape == (B, N_OUT)
    assert jnp.allclose(out, ref, atol=2e-2, rtol=2e-2), "mismatch vs reference"

    print("KERNEL_OK")
</pallas_src>

<mosaic_0001>
module attributes {stable_mosaic.version = 11 : i64} {
  func.func @_mlp_kernel(%arg0: i32, %arg1: memref<128x16xf32, #tpu.memory_space<vmem>>, %arg2: memref<32x16xbf16, #tpu.memory_space<vmem>>, %arg3: memref<32x1xf32, #tpu.memory_space<vmem>>, %arg4: memref<32x32xbf16, #tpu.memory_space<vmem>>, %arg5: memref<32x1xf32, #tpu.memory_space<vmem>>, %arg6: memref<2x32xbf16, #tpu.memory_space<vmem>>, %arg7: memref<2x1xf32, #tpu.memory_space<vmem>>, %arg8: memref<2x128xf32, #tpu.memory_space<vmem>>) attributes {dimension_semantics = [#tpu.dimension_semantics<parallel>], iteration_bounds = array<i64: 1>, scalar_prefetch = 0 : i64, scratch_operands = 0 : i64, tpu.core_type = #tpu.core_type<tc>, window_params = [{transform_indices = @transform_0, window_bounds = array<i64: 128, 16>}, {pipeline_mode = #tpu.pipeline_mode<synchronous>, transform_indices = @transform_1, window_bounds = array<i64: 32, 16>}, {pipeline_mode = #tpu.pipeline_mode<synchronous>, transform_indices = @transform_2, window_bounds = array<i64: 32, 1>}, {pipeline_mode = #tpu.pipeline_mode<synchronous>, transform_indices = @transform_3, window_bounds = array<i64: 32, 32>}, {pipeline_mode = #tpu.pipeline_mode<synchronous>, transform_indices = @transform_4, window_bounds = array<i64: 32, 1>}, {pipeline_mode = #tpu.pipeline_mode<synchronous>, transform_indices = @transform_5, window_bounds = array<i64: 2, 32>}, {pipeline_mode = #tpu.pipeline_mode<synchronous>, transform_indices = @transform_6, window_bounds = array<i64: 2, 1>}, {transform_indices = @transform_7, window_bounds = array<i64: 2, 128>}]} {
    %c0 = arith.constant 0 : index
    %c0_0 = arith.constant 0 : index
    %0 = vector.load %arg1[%c0, %c0_0] : memref<128x16xf32, #tpu.memory_space<vmem>>, vector<128x16xf32>
    %1 = arith.truncf %0 : vector<128x16xf32> to vector<128x16xbf16>
    %c0_1 = arith.constant 0 : index
    %c0_2 = arith.constant 0 : index
    %2 = vector.load %arg2[%c0_1, %c0_2] : memref<32x16xbf16, #tpu.memory_space<vmem>>, vector<32x16xbf16>
    %cst = arith.constant dense<0.000000e+00> : vector<32x128xf32>
    %3 = tpu.matmul %2, %1, %cst {dimension_numbers = #tpu.dot_dimension_numbers<[1], [1], [0], [0], [0, 0, 1, 0], [], []>} : vector<32x16xbf16>, vector<128x16xbf16>, vector<32x128xf32> -> vector<32x128xf32>
    %c0_3 = arith.constant 0 : index
    %c0_4 = arith.constant 0 : index
    %4 = vector.load %arg3[%c0_3, %c0_4] : memref<32x1xf32, #tpu.memory_space<vmem>>, vector<32x1xf32>
    %5 = vector.broadcast %4 : vector<32x1xf32> to vector<32x128xf32>
    %6 = arith.addf %3, %5 : vector<32x128xf32>
    %cst_5 = arith.constant 0.00999999977 : f32
    %7 = vector.broadcast %cst_5 : f32 to vector<32x128xf32>
    %8 = arith.mulf %7, %6 : vector<32x128xf32>
    %9 = arith.maximumf %6, %8 : vector<32x128xf32>
    %c0_6 = arith.constant 0 : index
    %c0_7 = arith.constant 0 : index
    %10 = vector.load %arg4[%c0_6, %c0_7] : memref<32x32xbf16, #tpu.memory_space<vmem>>, vector<32x32xbf16>
    %11 = arith.truncf %9 : vector<32x128xf32> to vector<32x128xbf16>
    %cst_8 = arith.constant dense<0.000000e+00> : vector<32x128xf32>
    %12 = tpu.matmul %10, %11, %cst_8 {dimension_numbers = #tpu.dot_dimension_numbers<[1], [0], [0], [1], [0, 0, 1, 1], [], []>} : vector<32x32xbf16>, vector<32x128xbf16>, vector<32x128xf32> -> vector<32x128xf32>
    %c0_9 = arith.constant 0 : index
    %c0_10 = arith.constant 0 : index
    %13 = vector.load %arg5[%c0_9, %c0_10] : memref<32x1xf32, #tpu.memory_space<vmem>>, vector<32x1xf32>
    %14 = vector.broadcast %13 : vector<32x1xf32> to vector<32x128xf32>
    %15 = arith.addf %12, %14 : vector<32x128xf32>
    %cst_11 = arith.constant 0.00999999977 : f32
    %16 = vector.broadcast %cst_11 : f32 to vector<32x128xf32>
    %17 = arith.mulf %16, %15 : vector<32x128xf32>
    %18 = arith.maximumf %15, %17 : vector<32x128xf32>
    %c0_12 = arith.constant 0 : index
    %c0_13 = arith.constant 0 : index
    %19 = vector.load %arg6[%c0_12, %c0_13] : memref<2x32xbf16, #tpu.memory_space<vmem>>, vector<2x32xbf16>
    %20 = arith.truncf %18 : vector<32x128xf32> to vector<32x128xbf16>
    %cst_14 = arith.constant dense<0.000000e+00> : vector<2x128xf32>
    %21 = tpu.matmul %19, %20, %cst_14 {dimension_numbers = #tpu.dot_dimension_numbers<[1], [0], [0], [1], [0, 0, 1, 1], [], []>} : vector<2x32xbf16>, vector<32x128xbf16>, vector<2x128xf32> -> vector<2x128xf32>
    %c0_15 = arith.constant 0 : index
    %c0_16 = arith.constant 0 : index
    %22 = vector.load %arg7[%c0_15, %c0_16] : memref<2x1xf32, #tpu.memory_space<vmem>>, vector<2x1xf32>
    %23 = vector.broadcast %22 : vector<2x1xf32> to vector<2x128xf32>
    %24 = arith.addf %21, %23 : vector<2x128xf32>
    %c0_17 = arith.constant 0 : index
    %c0_18 = arith.constant 0 : index
    %25 = vector.load %arg8[%c0_17, %c0_18] : memref<2x128xf32, #tpu.memory_space<vmem>>, vector<2x128xf32>
    tpu.vector_store %arg8[%c0_17, %c0_18], %24 {strides = array<i32>} : memref<2x128xf32, #tpu.memory_space<vmem>>, vector<2x128xf32>,
    return
  }
  func.func @transform_0(%arg0: i32) -> (i32, i32) {
    %c0_i32 = arith.constant 0 : i32
    %c0_i32_0 = arith.constant 0 : i32
    return %arg0, %c0_i32 : i32, i32
  }
  func.func @transform_1(%arg0: i32) -> (i32, i32) {
    %c0_i32 = arith.constant 0 : i32
    %c0_i32_0 = arith.constant 0 : i32
    %c0_i32_1 = arith.constant 0 : i32
    return %c0_i32, %c0_i32_0 : i32, i32
  }
  func.func @transform_2(%arg0: i32) -> (i32, i32) {
    %c0_i32 = arith.constant 0 : i32
    %c0_i32_0 = arith.constant 0 : i32
    %c0_i32_1 = arith.constant 0 : i32
    return %c0_i32, %c0_i32_0 : i32, i32
  }
  func.func @transform_3(%arg0: i32) -> (i32, i32) {
    %c0_i32 = arith.constant 0 : i32
    %c0_i32_0 = arith.constant 0 : i32
    %c0_i32_1 = arith.constant 0 : i32
    return %c0_i32, %c0_i32_0 : i32, i32
  }
  func.func @transform_4(%arg0: i32) -> (i32, i32) {
    %c0_i32 = arith.constant 0 : i32
    %c0_i32_0 = arith.constant 0 : i32
    %c0_i32_1 = arith.constant 0 : i32
    return %c0_i32, %c0_i32_0 : i32, i32
  }
  func.func @transform_5(%arg0: i32) -> (i32, i32) {
    %c0_i32 = arith.constant 0 : i32
    %c0_i32_0 = arith.constant 0 : i32
    %c0_i32_1 = arith.constant 0 : i32
    return %c0_i32, %c0_i32_0 : i32, i32
  }
  func.func @transform_6(%arg0: i32) -> (i32, i32) {
    %c0_i32 = arith.constant 0 : i32
    %c0_i32_0 = arith.constant 0 : i32
    %c0_i32_1 = arith.constant 0 : i32
    return %c0_i32, %c0_i32_0 : i32, i32
  }
  func.func @transform_7(%arg0: i32) -> (i32, i32) {
    %c0_i32 = arith.constant 0 : i32
    %c0_i32_0 = arith.constant 0 : i32
    return %c0_i32, %arg0 : i32, i32
  }
}

</mosaic_0001>

<bundles_post_ra>
// kernel: met_network_forward.1
= control target key start
LH: loop header
LB: loop body
LE: loop exit
PB: predicated region body
PF: predicated region fallthrough
CT: control target
= control target key end

     0   :  { %vm90_vm0 = vcmask 130048   ;;  %s476_s0 = inlined_call_operand.vmem [shape: f32[128,16], index: 0, kind: input, shape index: {}]   ;;  %s477_s1 = inlined_call_operand.vmem [shape: bf16[32,16], index: 1, kind: input, shape index: {}]   ;;  %s478_s2 = inlined_call_operand.vmem [shape: f32[32,1], index: 2, kind: input, shape index: {}]   ;;  %s479_s3 = inlined_call_operand.vmem [shape: bf16[32,32], index: 3, kind: input, shape index: {}]   ;;  %s480_s4 = inlined_call_operand.vmem [shape: f32[32,1], index: 4, kind: input, shape index: {}]   ;;  %s481_s5 = inlined_call_operand.vmem [shape: bf16[2,32], index: 5, kind: input, shape index: {}]   ;;  %s482_s6 = inlined_call_operand.vmem [shape: f32[2,1], index: 6, kind: input, shape index: {}]   ;;  %s483_s7 = inlined_call_operand.hbm [shape: f32[2,128], index: 7, kind: output, shape index: {}]  }
   0x1   :  { %v42_v0 = vld [vmem:[%s476_s0 + $0x70] sm:$0xff]  ;;  %v43_v1 = vld [vmem:[%s476_s0 + $0x78] sm:$0xff]  ;;  %v40_v3 = vld [vmem:[%s476_s0 + $0x60] sm:$0xff] }
   0x2   :  { %v51_v2 = vpack.c.bf16 %v43_v1, %v42_v0  ;;  %v41_v4 = vld [vmem:[%s476_s0 + $0x68] sm:$0xff] }
   0x4   :  { %v119_v5 = vsel %vm90_vm0, %v51_v2, 0 }
   0x5   :  { %12 = vsyncpa [#allocation3], 0  ;;  %121 = vmatpush.bf16.xpose.msra.mxu0 %v119_v5  ;;  %289 = vmatpush.bf16.xpose.msra.mxu3 %v119_v5  ;;  %v50_v6 = vpack.c.bf16 %v41_v4, %v40_v3  ;;  %v38_v8 = vld [vmem:[%s476_s0 + $0x50] sm:$0xff]  ;;  %v39_v9 = vld [vmem:[%s476_s0 + $0x58] sm:$0xff]  ;;  %v328_v19 = vmov 0   ;;  %vm188_vm1 = vcmask 261120  }
   0x6   :  { %v49_v10 = vpack.c.bf16 %v39_v9, %v38_v8  ;;  %v36_v12 = vld [vmem:[%s476_s0 + $0x40] sm:$0xff]  ;;  %v37_v13 = vld [vmem:[%s476_s0 + $0x48] sm:$0xff]  ;;  %v34_v16 = vld [vmem:[%s476_s0 + $0x30] sm:$0xff]  ;;  %299 = vset.pattern.permute.xlu0 %v328_v19  ;;  %300 = vset.pattern.permute.xlu1 %v328_v19  ;;  %s329_s9 = smov [#allocation2]   ;;  %s255_s13 = sshll.u32 %s483_s7, 4  ;;  %s256_s13 = int_to_ptr.hbm [resolvable:$true] %s255_s13 }
   0x7   :  { %v116_v7 = vsel %vm90_vm0, %v50_v6, 0  ;;  %v48_v14 = vpack.c.bf16 %v37_v13, %v36_v12  ;;  %v35_v17 = vld [vmem:[%s476_s0 + $0x38] sm:$0xff]  ;;  %301 = vset.pattern.permute.xlu2 %v328_v19  ;;  %v32_v21 = vld [vmem:[%s476_s0 + $0x20] sm:$0xff]  ;;  %v33_v22 = vld [vmem:[%s476_s0 + $0x28] sm:$0xff]  ;;  %s253_s10 = sshll.u32 %s329_s9, 4  ;;  %s254_s10 = int_to_ptr.vmem [resolvable:$true] %s253_s10 }
   0x8   :  { %v113_v11 = vsel %vm90_vm0, %v49_v10, 0  ;;  %v47_v18 = vpack.c.bf16 %v35_v17, %v34_v16  ;;  %v58_v23 = vld [vmem:[%s478_s2 + $0x10] sm:$0xff]  ;;  %v56_v24 = vld [vmem:[%s478_s2] sm:$0xff]  ;;  %v46_v25 = vpack.c.bf16 %v33_v22, %v32_v21  ;;  %v31_v28 = vld [vmem:[%s476_s0 + $0x18] sm:$0xff] }
   0x9   :  { %v110_v15 = vsel %vm90_vm0, %v48_v14, 0  ;;  %72 = vperm.xlu0 %299, %v58_v23   ;;  %62 = vperm.xlu1 %300, %v56_v24   ;;  %v30_v27 = vld [vmem:[%s476_s0 + $0x10] sm:$0xff]  ;;  %v59_v29 = vld [vmem:[%s478_s2 + $0x18] sm:$0xff]  ;;  %v57_v30 = vld [vmem:[%s478_s2 + $0x8] sm:$0xff] }
   0xa   :  { %v107_v20 = vsel %vm90_vm0, %v47_v18, 0  ;;  %v104_v26 = vsel %vm90_vm0, %v46_v25, 0  ;;  %v45_v31 = vpack.c.bf16 %v31_v28, %v30_v27  ;;  %v28_v33 = vld [vmem:[%s476_s0] sm:$0xff]  ;;  %v29_v34 = vld [vmem:[%s476_s0 + $0x8] sm:$0xff]  ;;  %v156_v52 = vld [vmem:[%s480_s4 + $0x10] sm:$0xff] }
   0xb   :  { %v154_v35 = vld [vmem:[%s480_s4] sm:$0xff]  ;;  %v155_v36 = vld [vmem:[%s480_s4 + $0x8] sm:$0xff]  ;;  %v44_v37 = vpack.c.bf16 %v29_v34, %v28_v33  ;;  %170 = vperm.xlu2 %301, %v156_v52   ;;  %v157_v60 = vld [vmem:[%s480_s4 + $0x18] sm:$0xff] }
   0xc   :  { %v101_v32 = vsel %vm90_vm0, %v45_v31, 0  ;;  %v285_v39 = vld [vmem:[%s477_s1] sm:$0xff]  ;;  %v286_v40 = vld [vmem:[%s477_s1 + $0x8] sm:$0xff] }
   0xd   :  { %122 = vmatpush.bf16.xpose.msra.mxu0 %v116_v7  ;;  %290 = vmatpush.bf16.xpose.msra.mxu3 %v116_v7  ;;  %v98_v38 = vsel %vm90_vm0, %v44_v37, 0  ;;  %v287_v1 = vld [vmem:[%s479_s3] sm:$0xff]  ;;  %v288_v3 = vld [vmem:[%s479_s3 + $0x8] sm:$0xff] }
   0xe   :  { %v225_v2 = vld [vmem:[%s482_s6] sm:$0x3] }
  0x11   :  { %77 = vperm.xlu0 %299, %v59_v29   ;;  %67 = vperm.xlu1 %300, %v57_v30  }
  0x13   :  { %175 = vperm.xlu2 %301, %v157_v60  }
  0x15   :  { %123 = vmatpush.bf16.xpose.msra.mxu0 %v113_v11  ;;  %291 = vmatpush.bf16.xpose.msra.mxu3 %v113_v11 }
  0x19   :  { %160 = vperm.xlu0 %299, %v154_v35   ;;  %165 = vperm.xlu1 %300, %v155_v36  }
  0x1b   :  { %228 = vperm.xlu2 %301, %v225_v2  }
  0x1d   :  { %124 = vmatpush.bf16.xpose.msra.mxu0 %v110_v15  ;;  %292 = vmatpush.bf16.xpose.msra.mxu3 %v110_v15 }
  0x25   :  { %125 = vmatpush.bf16.xpose.msra.mxu0 %v107_v20  ;;  %293 = vmatpush.bf16.xpose.msra.mxu3 %v107_v20 }
  0x2d   :  { %126 = vmatpush.bf16.xpose.msra.mxu0 %v104_v26  ;;  %294 = vmatpush.bf16.xpose.msra.mxu3 %v104_v26  ;;  %v222_v26 = vld [vmem:[%s481_s5] sm:$0x1] }
  0x35   :  { %127 = vmatpush.bf16.xpose.msra.mxu0 %v101_v32  ;;  %295 = vmatpush.bf16.xpose.msra.mxu3 %v101_v32 }
  0x3d   :  { %128 = vmatpush.bf16.xpose.msra.mxu0 %v98_v38  ;;  %296 = vmatpush.bf16.xpose.msra.mxu3 %v98_v38 }
  0x44   :  { %272 = vmatmul.msk.bf16.vlgmr.msra.gmra.mxu0 %vm90_vm0, %v285_v39  ;;  %273 = vmatmul.msk.bf16.vlgmr.msra.gmra.mxu3 %vm90_vm0, %v286_v40 }
  0x65   :  { %v171_v6 = vpop.permute.xlu2 %170 }
  0x6d   :  { %v176_v12 = vpop.permute.xlu2 %175 }
  0x75   :  { %v229_v27 = vpop.permute.xlu2 %228 }
  0x7b   :  { %v63_v42 = vpop.permute.xlu1 %62  ;;  %v73_v43 = vpop.permute.xlu0 %72 }
  0x83   :  { %v68_v47 = vpop.permute.xlu1 %67  ;;  %v78_v50 = vpop.permute.xlu0 %77 }
  0x8b   :  { %v166_v9 = vpop.permute.xlu1 %165  ;;  %v161_v10 = vpop.permute.xlu0 %160 }
  0xc1   :  { %v130_v41 = vpop.f32.mrf.mxu0 }
  0xc2   :  { %v131_v48 = vadd.f32 %v130_v41, %v63_v42 }
  0xc4   :  { %v140_v55 = vmul.f32 0.01, %v131_v48 }
  0xc6   :  { %v144_v61 = vmax.f32 %v131_v48, %v140_v55 }
  0xc7   :  { %v135_v44 = vpop.f32.mrf.mxu3 }
  0xc8   :  { %v136_v46 = vadd.f32 %v135_v44, %v73_v43 }
  0xc9   :  { %v132_v45 = vpop.f32.mrf.mxu0 }
  0xca   :  { %v133_v49 = vadd.f32 %v132_v45, %v68_v47  ;;  %v142_v53 = vmul.f32 0.01, %v136_v46 }
  0xcc   :  { %v141_v56 = vmul.f32 0.01, %v133_v49  ;;  %v146_v58 = vmax.f32 %v136_v46, %v142_v53 }
  0xce   :  { %v145_v62 = vmax.f32 %v133_v49, %v141_v56 }
  0xcf   :  { %v137_v51 = vpop.f32.mrf.mxu3 }
  0xd0   :  { %v138_v54 = vadd.f32 %v137_v51, %v78_v50  ;;  %v152_v0 = vpack.c.bf16 %v145_v62, %v144_v61 }
  0xd2   :  { %v143_v57 = vmul.f32 0.01, %v138_v54 }
  0xd4   :  { %v147_v59 = vmax.f32 %v138_v54, %v143_v57 }
  0xd6   :  { %v153_v63 = vpack.c.bf16 %v147_v59, %v146_v58 }
  0xd8   :  { %201 = vmatpush.bf16.msra.mxu1 %v153_v63 }
  0xdc   :  { %202 = vmatpush.bf16.msra.mxu1 %v152_v0 }
  0xdf   :  { %282 = vmatmul.msk.bf16.vlgmr.msra.gmra.mxu1 %vm188_vm1, %v287_v1 }
  0xef   :  { %283 = vmatmul.msk.bf16.gmra.mxu1 %vm188_vm1, %v288_v3 }
 0x15c   :  { %v204_v4 = vpop.f32.mrf.mxu1 }
 0x15d   :  { %v205_v14 = vadd.f32 %v204_v4, %v161_v10 }
 0x15f   :  { %v214_v19 = vmul.f32 0.01, %v205_v14 }
 0x161   :  { %v218_v24 = vmax.f32 %v205_v14, %v214_v19 }
 0x164   :  { %v206_v5 = vpop.f32.mrf.mxu1 }
 0x165   :  { %v207_v11 = vadd.f32 %v206_v5, %v166_v9 }
 0x167   :  { %v215_v17 = vmul.f32 0.01, %v207_v11 }
 0x169   :  { %v219_v22 = vmax.f32 %v207_v11, %v215_v17 }
 0x16b   :  { %v223_v25 = vpack.c.bf16 %v219_v22, %v218_v24 }
 0x16c   :  { %v209_v7 = vpop.f32.mrf.mxu1 }
 0x16d   :  { %v210_v8 = vadd.f32 %v209_v7, %v171_v6 }
 0x16f   :  { %v216_v15 = vmul.f32 0.01, %v210_v8 }
 0x171   :  { %v220_v20 = vmax.f32 %v210_v8, %v216_v15 }
 0x174   :  { %v211_v13 = vpop.f32.mrf.mxu1 }
 0x175   :  { %v212_v16 = vadd.f32 %v211_v13, %v176_v12 }
 0x177   :  { %v217_v18 = vmul.f32 0.01, %v212_v16 }
 0x179   :  { %v221_v21 = vmax.f32 %v212_v16, %v217_v18 }
 0x17b   :  { %v224_v23 = vpack.c.bf16 %v221_v21, %v220_v20 }
 0x17d   :  { %240 = vmatpush.bf16.msra.mxu2 %v224_v23 }
 0x181   :  { %241 = vmatpush.bf16.msra.mxu2 %v223_v25 }
 0x184   :  { %284 = vmatmul.msk.bf16.vlgmr.msra.gmra.mxu2 %vm188_vm1, %v222_v26 }
 0x207   :  { %v243_v28 = vpop.f32.mrf.mxu2 }
 0x208   :  { %v244_v29 = vadd.f32 %v243_v28, %v229_v27 }
 0x20a   :  { %247 = vst [vmem:[#allocation2] sm:$0x3] %v244_v29 }
 0x20b   :  { %258 = dma.vmem_to_hbm [thread:$0]  %s254_s10, 32, %s256_s13, [#allocation3]  }
 0x20f   :  { %v245_v30 = vpop.f32.mrf.mxu2 }
 0x210   :  { %326 = dma.done.wait [#allocation3], 32  }
 0x211   :  { %327 = vsyncadd [#allocation3], 4294967264 }
 0x212   :  { %263 = vsyncpa [#allocation3], 1 }

</bundles_post_ra>
